<compile_context>
chip_gen: v7x
topology: tpu7x:2x2x1
jax: 0.10.0
libtpu: 0.0.40
codegen_flags: <defaults>
</compile_context>

<pallas_src>
import functools

import jax
import jax.numpy as jnp
from jax import lax
from jax.experimental import pallas as pl
from jax.experimental.pallas import tpu as pltpu


def _round_up(x: int, m: int) -> int:
    return (x + m - 1) // m * m


def _clip_actor_loss_kernel(old_ref, new_ref, adv_ref, out_ref, *,
                            eps, batch, tile_rows, tiles_per_split):
    split = pl.program_id(0)   # megacore / batch-split axis ("parallel")
    i = pl.program_id(1)       # reduction axis over row tiles ("arbitrary")

    # Output block stays resident across the reduction axis; zero it once.
    @pl.when(i == 0)
    def _():
        out_ref[...] = jnp.zeros_like(out_ref)

    # Upcast after load: inputs may be bf16 in HBM, math/accumulation in f32.
    old = old_ref[...].astype(jnp.float32)
    new = new_ref[...].astype(jnp.float32)
    adv = adv_ref[...].astype(jnp.float32)          # (TB, 1) or (TB, A)

    ratio = jnp.exp(new - old)                                   # EUP
    clipped = jnp.clip(ratio, 1.0 - eps, 1.0 + eps)
    adv_b = jnp.broadcast_to(adv, ratio.shape)                   # one broadcast
    contrib = jnp.minimum(ratio * adv_b, clipped * adv_b)        # (TB, A)

    # Un-clamped tile index so fully-padded (clamped duplicate) tiles mask to 0.
    t = split * tiles_per_split + i
    is_full = (t + 1) * tile_rows <= batch          # tile has no padded rows

    # Hot path: interior tiles -> straight reduce to scalar (XLU) + accumulate.
    @pl.when(is_full)
    def _():
        out_ref[...] += jnp.sum(contrib).reshape(1, 1, 1)

    # Tail path: ragged last tile / padded split tiles -> mask, then reduce.
    @pl.when(jnp.logical_not(is_full))
    def _():
        row = t * tile_rows + lax.broadcasted_iota(jnp.int32, (tile_rows, 1), 0)
        masked = jnp.where(row < batch, contrib, 0.0)
        out_ref[...] += jnp.sum(masked).reshape(1, 1, 1)


def _num_batch_splits() -> int:
    """Use a 2-way 'parallel' batch split only on multi-TensorCore chips."""
    try:
        kind = jax.devices()[0].device_kind.lower()
    except Exception:
        return 1
    single_tc = ("v5e", "v5 lite", "v5lite", "v6e", "v6 lite", "v6lite", "trillium")
    if any(tag in kind for tag in single_tc):
        return 1
    return 2


def clip_actor_loss(old_log_prob_actions, new_log_prob_actions, advantages,
                    eps: float = 0.2, *, tile_rows=None):
    """Pallas implementation of ClipActorLoss.forward. Returns a scalar."""
    old_lp = jnp.asarray(old_log_prob_actions)
    new_lp = jnp.asarray(new_log_prob_actions)
    adv = jnp.asarray(advantages)

    if old_lp.ndim != 2 or old_lp.shape != new_lp.shape:
        raise ValueError("expected matching 2-D (batch, actions) log-prob arrays")
    if adv.ndim == 1:
        adv = adv[:, None]                      # mirror torch unsqueeze(-1)
    b, a = old_lp.shape
    if adv.ndim != 2 or adv.shape[0] != b or adv.shape[1] not in (1, a):
        raise ValueError(
            f"advantages shape {adv.shape} not broadcastable against {(b, a)}")

    denom = float(b * a)                        # torch .mean() over broadcast (B, A)

    # Sublane-packing multiple for the narrowest streamed dtype
    # (f32 -> 8 rows, bf16 -> 16, int8/fp8 -> 32).
    min_itemsize = min(old_lp.dtype.itemsize, new_lp.dtype.itemsize,
                       adv.dtype.itemsize)
    mult = max(8, 32 // max(1, min_itemsize))

    # Tile rows: ~2 MiB per streamed log-prob tile (HBM-bound -> big steps to
    # amortize per-step overhead), capped at 8192 rows and the padded batch.
    lp_itemsize = max(old_lp.dtype.itemsize, new_lp.dtype.itemsize)
    if tile_rows is None:
        tile_rows = (2 << 20) // max(1, a * lp_itemsize)
    tile_rows = max(mult, min(int(tile_rows), 8192))
    tile_rows = _round_up(tile_rows, mult)
    tile_rows = min(tile_rows, _round_up(b, mult))

    total_tiles = pl.cdiv(b, tile_rows)
    n_split = _num_batch_splits() if total_tiles >= 2 else 1
    tiles_per_split = pl.cdiv(total_tiles, n_split)

    def lp_index_map(split, i):
        t = split * tiles_per_split + i
        return (jnp.minimum(t, total_tiles - 1), 0)   # clamp padded split tiles

    kernel = functools.partial(
        _clip_actor_loss_kernel, eps=float(eps), batch=b,
        tile_rows=tile_rows, tiles_per_split=tiles_per_split)

    partials = pl.pallas_call(
        kernel,
        out_shape=jax.ShapeDtypeStruct((n_split, 1, 1), jnp.float32),
        grid_spec=pltpu.PrefetchScalarGridSpec(
            num_scalar_prefetch=0,
            grid=(n_split, tiles_per_split),
            in_specs=[
                pl.BlockSpec((tile_rows, a), lp_index_map),
                pl.BlockSpec((tile_rows, a), lp_index_map),
                pl.BlockSpec((tile_rows, adv.shape[1]), lp_index_map),
            ],
            out_specs=pl.BlockSpec((1, 1, 1), lambda split, i: (split, 0, 0)),
        ),
        compiler_params=pltpu.CompilerParams(
            dimension_semantics=("parallel", "arbitrary"),
            vmem_limit_bytes=48 * 1024 * 1024,
        ),
    )(old_lp, new_lp, adv)

    # Final combine (tiny, wrapper-side): negate + multiply by 1/(B*A).
    return jnp.sum(partials) * (-1.0 / denom)


def _reference(old_lp, new_lp, adv, eps=0.2):
    old_lp = jnp.asarray(old_lp, jnp.float32)
    new_lp = jnp.asarray(new_lp, jnp.float32)
    adv = jnp.asarray(adv, jnp.float32)
    ratio = jnp.exp(new_lp - old_lp)
    if adv.ndim == 1:
        adv = adv[:, None]
    s1 = ratio * adv
    s2 = jnp.clip(ratio, 1.0 - eps, 1.0 + eps) * adv
    return -jnp.mean(jnp.minimum(s1, s2))


if __name__ == "__main__":
    key = jax.random.PRNGKey(0)
    k1, k2, k3 = jax.random.split(key, 3)

    # Test 1: simple aligned shape, 1-D advantages (the PyTorch default path).
    B, A = 8, 128
    old1 = jax.random.normal(k1, (B, A), jnp.float32) * 0.5 - 1.0
    new1 = jax.random.normal(k2, (B, A), jnp.float32) * 0.5 - 1.0
    adv1 = jax.random.normal(k3, (B,), jnp.float32)
    out1 = jax.block_until_ready(clip_actor_loss(old1, new1, adv1))
    ref1 = _reference(old1, new1, adv1)
    assert jnp.allclose(out1, ref1, rtol=1e-5, atol=1e-5), (out1, ref1)

    # Test 2: ragged batch + forced small tiles -> exercises the grid, the
    # gated tail masking, tile-index clamping and the (optional) 2-way split.
    B2, A2 = 20, 96
    old2 = jax.random.normal(k1, (B2, A2), jnp.float32) * 0.3
    new2 = jax.random.normal(k2, (B2, A2), jnp.float32) * 0.3
    adv2 = jax.random.normal(k3, (B2,), jnp.float32)
    out2 = jax.block_until_ready(clip_actor_loss(old2, new2, adv2, tile_rows=8))
    ref2 = _reference(old2, new2, adv2)
    assert jnp.allclose(out2, ref2, rtol=1e-5, atol=1e-5), (out2, ref2)

    # Test 3: bf16 inputs streamed from HBM, upcast in-kernel (tile_rows is
    # rounded up to the bf16 16-row sublane packing inside the wrapper).
    B3, A3 = 24, 128
    old3 = (jax.random.normal(k2, (B3, A3), jnp.float32) * 0.5).astype(jnp.bfloat16)
    new3 = (jax.random.normal(k3, (B3, A3), jnp.float32) * 0.5).astype(jnp.bfloat16)
    adv3 = (jax.random.normal(k1, (B3,), jnp.float32)).astype(jnp.bfloat16)
    out3 = jax.block_until_ready(clip_actor_loss(old3, new3, adv3, tile_rows=8))
    ref3 = _reference(old3, new3, adv3)
    assert jnp.allclose(out3, ref3, rtol=1e-4, atol=1e-4), (out3, ref3)

    print("KERNEL_OK")
</pallas_src>

<mosaic_0001>
module attributes {stable_mosaic.version = 11 : i64} {
  func.func @_clip_actor_loss_kernel(%arg0: i32, %arg1: i32, %arg2: memref<8x128xf32, #tpu.memory_space<vmem>>, %arg3: memref<8x128xf32, #tpu.memory_space<vmem>>, %arg4: memref<8x1xf32, #tpu.memory_space<vmem>>, %arg5: memref<1x1x1xf32, #tpu.memory_space<vmem>>) attributes {dimension_semantics = [#tpu.dimension_semantics<parallel>, #tpu.dimension_semantics<arbitrary>], iteration_bounds = array<i64: 1, 1>, scalar_prefetch = 0 : i64, scratch_operands = 0 : i64, tpu.core_type = #tpu.core_type<tc>, window_params = [{transform_indices = @transform_0, window_bounds = array<i64: 8, 128>}, {transform_indices = @transform_1, window_bounds = array<i64: 8, 128>}, {transform_indices = @transform_2, window_bounds = array<i64: 8, 1>}, {transform_indices = @transform_3, window_bounds = array<i64: 1, 1, 1>}]} {
    %c0_i32 = arith.constant 0 : i32
    %0 = arith.cmpi eq, %arg1, %c0_i32 : i32
    %1 = arith.extui %0 : i1 to i32
    %c0_i32_0 = arith.constant 0 : i32
    %2 = arith.cmpi ne, %1, %c0_i32_0 : i32
    scf.if %2 {
      %cst_11 = arith.constant 0.000000e+00 : f32
      %27 = vector.broadcast %cst_11 : f32 to vector<1x1x1xf32>
      %c0_12 = arith.constant 0 : index
      %c0_13 = arith.constant 0 : index
      %c0_14 = arith.constant 0 : index
      %28 = vector.load %arg5[%c0_12, %c0_13, %c0_14] : memref<1x1x1xf32, #tpu.memory_space<vmem>>, vector<1x1x1xf32>
      tpu.vector_store %arg5[%c0_12, %c0_13, %c0_14], %27 {strides = array<i32>} : memref<1x1x1xf32, #tpu.memory_space<vmem>>, vector<1x1x1xf32>,
    } else {
    }
    %c0 = arith.constant 0 : index
    %c0_1 = arith.constant 0 : index
    %3 = vector.load %arg2[%c0, %c0_1] : memref<8x128xf32, #tpu.memory_space<vmem>>, vector<8x128xf32>
    %c0_2 = arith.constant 0 : index
    %c0_3 = arith.constant 0 : index
    %4 = vector.load %arg3[%c0_2, %c0_3] : memref<8x128xf32, #tpu.memory_space<vmem>>, vector<8x128xf32>
    %c0_4 = arith.constant 0 : index
    %c0_5 = arith.constant 0 : index
    %5 = vector.load %arg4[%c0_4, %c0_5] : memref<8x1xf32, #tpu.memory_space<vmem>>, vector<8x1xf32>
    %6 = arith.subf %4, %3 : vector<8x128xf32>
    %7 = math.exp %6 : vector<8x128xf32>
    %cst = arith.constant 8.000000e-01 : f32
    %cst_6 = arith.constant 1.200000e+00 : f32
    %8 = vector.broadcast %cst : f32 to vector<8x128xf32>
    %9 = arith.maximumf %8, %7 : vector<8x128xf32>
    %10 = vector.broadcast %cst_6 : f32 to vector<8x128xf32>
    %11 = arith.minimumf %10, %9 : vector<8x128xf32>
    %12 = vector.shape_cast %5 : vector<8x1xf32> to vector<8x1xf32>
    %13 = vector.broadcast %12 : vector<8x1xf32> to vector<8x128xf32>
    %14 = arith.mulf %7, %13 : vector<8x128xf32>
    %15 = arith.mulf %11, %13 : vector<8x128xf32>
    %16 = arith.minimumf %14, %15 : vector<8x128xf32>
    %c1_i32 = arith.constant 1 : i32
    %17 = arith.muli %arg0, %c1_i32 : i32
    %18 = arith.addi %17, %arg1 : i32
    %c1_i32_7 = arith.constant 1 : i32
    %19 = arith.addi %18, %c1_i32_7 : i32
    %c8_i32 = arith.constant 8 : i32
    %20 = arith.muli %19, %c8_i32 : i32
    %c8_i32_8 = arith.constant 8 : i32
    %21 = arith.cmpi sle, %20, %c8_i32_8 : i32
    %22 = arith.extui %21 : i1 to i32
    %c0_i32_9 = arith.constant 0 : i32
    %23 = arith.cmpi ne, %22, %c0_i32_9 : i32
    scf.if %23 {
      %c0_11 = arith.constant 0 : index
      %c0_12 = arith.constant 0 : index
      %c0_13 = arith.constant 0 : index
      %27 = vector.load %arg5[%c0_11, %c0_12, %c0_13] : memref<1x1x1xf32, #tpu.memory_space<vmem>>, vector<1x1x1xf32>
      %28 = vector.shape_cast %16 : vector<8x128xf32> to vector<1x8x128xf32>
      %cst_14 = arith.constant dense<0.000000e+00> : vector<1xf32>
      %29 = vector.multi_reduction <add>, %28, %cst_14 [1, 2] : vector<1x8x128xf32> to vector<1xf32>
      %30 = vector.shape_cast %29 : vector<1xf32> to vector<1x1x1xf32>
      %31 = vector.extract %30[0, 0, 0] : f32 from vector<1x1x1xf32>
      %32 = vector.broadcast %31 : f32 to vector<1x1x1xf32>
      %33 = arith.addf %27, %32 : vector<1x1x1xf32>
      %c0_15 = arith.constant 0 : index
      %c0_16 = arith.constant 0 : index
      %c0_17 = arith.constant 0 : index
      %34 = vector.load %arg5[%c0_15, %c0_16, %c0_17] : memref<1x1x1xf32, #tpu.memory_space<vmem>>, vector<1x1x1xf32>
      tpu.vector_store %arg5[%c0_15, %c0_16, %c0_17], %33 {strides = array<i32>} : memref<1x1x1xf32, #tpu.memory_space<vmem>>, vector<1x1x1xf32>,
    } else {
    }
    %true = arith.constant true
    %24 = arith.xori %21, %true : i1
    %25 = arith.extui %24 : i1 to i32
    %c0_i32_10 = arith.constant 0 : i32
    %26 = arith.cmpi ne, %25, %c0_i32_10 : i32
    scf.if %26 {
      %c8_i32_11 = arith.constant 8 : i32
      %27 = arith.muli %18, %c8_i32_11 : i32
      %28 = tpu.iota {dimensions = array<i32: 0>} : vector<8x1xi32>
      %29 = vector.broadcast %27 : i32 to vector<8x1xi32>
      %30 = arith.addi %29, %28 : vector<8x1xi32>
      %c8_i32_12 = arith.constant 8 : i32
      %31 = vector.broadcast %c8_i32_12 : i32 to vector<8x1xi32>
      %32 = arith.cmpi slt, %30, %31 : vector<8x1xi32>
      %cst_13 = arith.constant 0.000000e+00 : f32
      %33 = vector.shape_cast %32 : vector<8x1xi1> to vector<8x1xi1>
      %34 = vector.broadcast %33 : vector<8x1xi1> to vector<8x128xi1>
      %35 = vector.broadcast %cst_13 : f32 to vector<8x128xf32>
      %36 = arith.select %34, %16, %35 : vector<8x128xi1>, vector<8x128xf32>
      %c0_14 = arith.constant 0 : index
      %c0_15 = arith.constant 0 : index
      %c0_16 = arith.constant 0 : index
      %37 = vector.load %arg5[%c0_14, %c0_15, %c0_16] : memref<1x1x1xf32, #tpu.memory_space<vmem>>, vector<1x1x1xf32>
      %38 = vector.shape_cast %36 : vector<8x128xf32> to vector<1x8x128xf32>
      %cst_17 = arith.constant dense<0.000000e+00> : vector<1xf32>
      %39 = vector.multi_reduction <add>, %38, %cst_17 [1, 2] : vector<1x8x128xf32> to vector<1xf32>
      %40 = vector.shape_cast %39 : vector<1xf32> to vector<1x1x1xf32>
      %41 = vector.extract %40[0, 0, 0] : f32 from vector<1x1x1xf32>
      %42 = vector.broadcast %41 : f32 to vector<1x1x1xf32>
      %43 = arith.addf %37, %42 : vector<1x1x1xf32>
      %c0_18 = arith.constant 0 : index
      %c0_19 = arith.constant 0 : index
      %c0_20 = arith.constant 0 : index
      %44 = vector.load %arg5[%c0_18, %c0_19, %c0_20] : memref<1x1x1xf32, #tpu.memory_space<vmem>>, vector<1x1x1xf32>
      tpu.vector_store %arg5[%c0_18, %c0_19, %c0_20], %43 {strides = array<i32>} : memref<1x1x1xf32, #tpu.memory_space<vmem>>, vector<1x1x1xf32>,
    } else {
    }
    return
  }
  func.func @transform_0(%arg0: i32, %arg1: i32) -> (i32, i32) {
    %c1_i32 = arith.constant 1 : i32
    %0 = arith.muli %arg0, %c1_i32 : i32
    %1 = arith.addi %0, %arg1 : i32
    %c0_i32 = arith.constant 0 : i32
    %2 = arith.minsi %1, %c0_i32 : i32
    %c0_i32_0 = arith.constant 0 : i32
    %c0_i32_1 = arith.constant 0 : i32
    return %2, %c0_i32_0 : i32, i32
  }
  func.func @transform_1(%arg0: i32, %arg1: i32) -> (i32, i32) {
    %c1_i32 = arith.constant 1 : i32
    %0 = arith.muli %arg0, %c1_i32 : i32
    %1 = arith.addi %0, %arg1 : i32
    %c0_i32 = arith.constant 0 : i32
    %2 = arith.minsi %1, %c0_i32 : i32
    %c0_i32_0 = arith.constant 0 : i32
    %c0_i32_1 = arith.constant 0 : i32
    return %2, %c0_i32_0 : i32, i32
  }
  func.func @transform_2(%arg0: i32, %arg1: i32) -> (i32, i32) {
    %c1_i32 = arith.constant 1 : i32
    %0 = arith.muli %arg0, %c1_i32 : i32
    %1 = arith.addi %0, %arg1 : i32
    %c0_i32 = arith.constant 0 : i32
    %2 = arith.minsi %1, %c0_i32 : i32
    %c0_i32_0 = arith.constant 0 : i32
    %c0_i32_1 = arith.constant 0 : i32
    return %2, %c0_i32_0 : i32, i32
  }
  func.func @transform_3(%arg0: i32, %arg1: i32) -> (i32, i32, i32) {
    %c0_i32 = arith.constant 0 : i32
    %c0_i32_0 = arith.constant 0 : i32
    %c0_i32_1 = arith.constant 0 : i32
    return %arg0, %c0_i32, %c0_i32_0 : i32, i32, i32
  }
}

</mosaic_0001>

<bundles_post_ra>
// kernel: tpu_custom_call.1
= control target key start
LH: loop header
LB: loop body
LE: loop exit
PB: predicated region body
PF: predicated region fallthrough
CT: control target
= control target key end

     0   :  { %8 = vsyncpa [#allocation3], 0  ;;  %s301_s0 = inlined_call_operand.vmem [shape: f32[8,128], index: 0, kind: input, shape index: {}]   ;;  %s302_s1 = inlined_call_operand.hbm [shape: f32[8,128], index: 1, kind: input, shape index: {}]   ;;  %s303_s2 = inlined_call_operand.vmem [shape: f32[8,1], index: 2, kind: input, shape index: {}]   ;;  %s304_s3 = inlined_call_operand.hbm [shape: f32[1,1,1], index: 3, kind: output, shape index: {}]  }
   0x1   :  { %9 = vsyncpa [#allocation4], 0  ;;  %s245_s12 = smov [#allocation2]   ;;  %s197_s16 = scalar_lea.hbm %s302_s1, 128 }
   0x2   :  { %s33_s13 = sshll.u32 %s245_s12, 4  ;;  %p198_p0 = scmp.ne.s32.totalorder %s302_s1, %s197_s16  ;;  %s34_s13 = int_to_ptr.vmem [resolvable:$true] %s33_s13 }
   0x3   :  { %p201_p1 = scmp.lt.u32.totalorder %s197_s16, %s302_s1 }
   0x5   :  { %p203_p2 = pnand %p201_p1, %p198_p0 }
   0x7   :  { %206 = shalt.err (!%p203_p2)
}
   0x8   :  { %s207_s21 = scalar_lea.vmem %s34_s13, 128  ;;  %p212_p4 = scmp.lt.s32.totalorder %s34_s13, %s34_s13 }
   0x9   :  { %p208_p3 = scmp.ne.s32.totalorder %s34_s13, %s207_s21  ;;  %p213_p5 = scmp.lt.s32.totalorder %s207_s21, %s207_s21 }
   0xb   :  { %p214_p6 = por %p213_p5, %p212_p4 }
   0xd   :  { %p215_p7 = pnand %p214_p6, %p208_p3 }
   0xf   :  { %218 = shalt.err (!%p215_p7)
}
  0x10   :  { %36 = dma.hbm_to_vmem [thread:$0]  %s302_s1, 128, %s34_s13, [#allocation3]  }
  0x11   :  { %241 = dma.done.wait [#allocation3], 128  }
  0x12   :  { %242 = vsyncadd [#allocation3], 4294967168  ;;  %vm93_vm0 = vcmask 0   ;;  %v246_v0 = vmov 0.0   ;;  %v247_v1 = vmov 0   ;;  %v97_v2 = vld [vmem:[%s303_s2] sm:$0xff] }
  0x13   :  { %94 = vst.msk [vmem:[#allocation5] sm:$0x1] %vm93_vm0, %v246_v0  ;;  %194 = vset.pattern.permute.xlu0 %v247_v1  ;;  %v95_v3 = vld [vmem:[%s301_s0] sm:$0xff]  ;;  %s248_s0 = smov [#allocation5]  }
  0x14   :  { %105 = vperm.xlu0 %194, %v97_v2   ;;  %v96_v4 = vld [vmem:[#allocation2] sm:$0xff]  ;;  %s165_s1 = sshll.u32 %s248_s0, 4  ;;  %s166_s1 = int_to_ptr.vmem [resolvable:$true] %s165_s1 }
  0x15   :  { %v98_v5 = vsub.f32 %v96_v4, %v95_v3  ;;  %s219_s28 = scalar_lea.vmem %s166_s1, 16  ;;  %s223_s29 = scalar_lea.vmem %s166_s1, 32 }
  0x16   :  { %p220_p8 = scmp.ne.s32.totalorder %s166_s1, %s219_s28  ;;  %p224_p9 = scmp.lt.s32.totalorder %s166_s1, %s166_s1 }
  0x17   :  { %v99_v6 = vmul.f32 1.442695, %v98_v5  ;;  %p225_p10 = scmp.lt.s32.totalorder %s223_s29, %s219_s28 }
  0x19   :  { %195 = vpow2.f32 %v99_v6  ;;  %p226_p11 = por %p225_p10, %p224_p9 }
  0x1a   :  { %v118_v21 = vld [vmem:[#allocation5] sm:$0x1] }
  0x1b   :  { %p227_p12 = pnand %p226_p11, %p220_p8 }
  0x23   :  { %v196_v7 = vpop.eup %195 }
  0x24   :  { %v101_v8 = vmax.f32 %v196_v7, 0.8 }
  0x26   :  { %v102_v9 = vmin.f32 %v101_v8, 1.2 }
  0x93   :  { %v106_v10 = vpop.permute.xlu0 %105 }
  0x94   :  { %v108_v11 = vmul.f32 %v196_v7, %v106_v10  ;;  %v109_v12 = vmul.f32 %v106_v10, %v102_v9 }
  0x96   :  { %v110_v13 = vmin.f32 %v108_v11, %v109_v12 }
  0x98   :  { %119 = vadd.xlane.f32.xlu0 %v110_v13 }
 0x125   :  { %v120_v14 = vpop.xlane.xlu0 %119 }
 0x126   :  { %v121_v15 = vrot.slane %v120_v14, 4 }
 0x128   :  { %v122_v16 = vadd.f32 %v121_v15, %v120_v14 }
 0x12a   :  { %v123_v17 = vrot.slane %v122_v16, 2 }
 0x12c   :  { %v124_v18 = vadd.f32 %v123_v17, %v122_v16 }
 0x12e   :  { %v125_v19 = vrot.slane %v124_v18, 1 }
 0x130   :  { %v126_v20 = vadd.f32 %v125_v19, %v124_v18 }
 0x132   :  { %188 = vpush %v126_v20 }
 0x163   :  { %s189_s2 = spop %188 }
 0x164   :  { %v128_v22 = vstv %s189_s2 }
 0x165   :  { %v129_v23 = vadd.f32 %v128_v22, %v118_v21 }
 0x167   :  { %131 = vst.msk [vmem:[#allocation5] sm:$0x1] %vm93_vm0, %v129_v23 }
 0x168   :  { %230 = shalt.err (!%p227_p12)
}
 0x169   :  { %s231_s5 = scalar_lea.hbm %s304_s3, 16 }
 0x16a   :  { %p232_p13 = scmp.ne.s32.totalorder %s304_s3, %s231_s5  ;;  %p235_p0 = scmp.lt.u32.totalorder %s231_s5, %s304_s3 }
 0x16c   :  { %p237_p1 = pnand %p235_p0, %p232_p13 }
 0x16e   :  { %240 = shalt.err (!%p237_p1)
}
 0x16f   :  { %168 = dma.vmem_to_hbm [thread:$0]  %s166_s1, 16, %s304_s3, [#allocation4]  }
 0x170   :  { %243 = dma.done.wait [#allocation4], 16  }
 0x171   :  { %244 = vsyncadd [#allocation4], 4294967280 }
 0x172   :  { %172 = vsyncpa [#allocation3], 1 }
 0x173   :  { %173 = vsyncpa [#allocation4], 1 }

</bundles_post_ra>
